<compile_context>
chip_gen: v5e
topology: v5e:2x2
jax: 0.10.0
libtpu: 0.0.40
codegen_flags: <defaults>
</compile_context>

<pallas_src>
import functools
import math

import jax
import jax.numpy as jnp
from jax.experimental import pallas as pl
from jax.experimental.pallas import tpu as pltpu


def _add_pe_kernel(x_ref, pe_ref, o_ref, *, scale):
    # x_ref, o_ref: (TR, M) row tile; pe_ref: (1, M) broadcast row (constant
    # index_map => DMA'd once, resident in VMEM for all grid steps).
    x = x_ref[...].astype(jnp.float32)
    o_ref[...] = (x * jnp.float32(scale) + pe_ref[...]).astype(o_ref.dtype)


def _pick_row_tile(n_rows, row_bytes):
    """Row-tile size: ~2 MiB blocks, multiple of 8 sublanes (or the full dim)."""
    if n_rows <= 8:
        return n_rows
    target_block_bytes = 2 * 1024 * 1024
    rows = max(8, target_block_bytes // max(1, row_bytes))
    tr = (rows // 8) * 8
    # Keep at least 2 grid steps so a second TensorCore (v7x) gets work.
    half = ((n_rows + 1) // 2 + 7) // 8 * 8
    tr = min(tr, max(8, half), n_rows)
    return max(8, tr)


def add_learned_positional_embedding(x, table, *, scale=True, donate_x=False):
    """out[i, j, :] = s * x[i, j, :] + table[j, :]  (module forward, eval mode)."""
    N0, N1, D = x.shape
    max_len, tD = table.shape
    assert tD == D, "embedding table width must match embed_dim"
    assert N1 <= max_len, "positions index past the embedding table (as in the module)"

    s = math.sqrt(D) if scale else 1.0

    # Flatten the broadcast axes -> lane-dense 2-D layout (last dim N1*D).
    M = N1 * D
    x2 = x.reshape(N0, M)
    pe2 = table[:N1, :].astype(jnp.float32).reshape(1, M)

    tr = _pick_row_tile(N0, M * jnp.dtype(x.dtype).itemsize)
    grid = (pl.cdiv(N0, tr),)

    kernel = functools.partial(_add_pe_kernel, scale=s)

    out2 = pl.pallas_call(
        kernel,
        out_shape=jax.ShapeDtypeStruct((N0, M), x.dtype),
        grid_spec=pltpu.PrefetchScalarGridSpec(
            num_scalar_prefetch=0,
            grid=grid,
            in_specs=[
                pl.BlockSpec((tr, M), lambda r: (r, 0)),  # x row tile
                pl.BlockSpec((1, M), lambda r: (0, 0)),   # pe row, constant index_map
            ],
            out_specs=pl.BlockSpec((tr, M), lambda r: (r, 0)),
        ),
        compiler_params=pltpu.CompilerParams(
            dimension_semantics=("parallel",),
            vmem_limit_bytes=32 * 1024 * 1024,  # safe budget on v5e/v6e/v7x
        ),
        input_output_aliases=({0: 0} if donate_x else {}),
    )(x2, pe2)

    return out2.reshape(N0, N1, D)


def _reference(x, table, *, scale=True):
    N0, N1, D = x.shape
    s = math.sqrt(D) if scale else 1.0
    pe = table[:N1, :].astype(jnp.float32)
    return (s * x.astype(jnp.float32) + pe[None, :, :]).astype(x.dtype)


# TODO(synk): nn.Dropout(p=0.1) is stochastic in train mode; only the
# eval-mode (identity) path is implemented here.


if __name__ == "__main__":
    # Module docstring layout: x is [seq_len, batch_size, embedding_dim];
    # positions index axis 1, so batch_size must be <= max_len (as in PyTorch).
    seq_len, batch, embed_dim, max_len = 8, 2, 64, 3

    key = jax.random.PRNGKey(0)
    kx, kt = jax.random.split(key)
    x = jax.random.normal(kx, (seq_len, batch, embed_dim), dtype=jnp.float32)
    table = jax.random.normal(kt, (max_len, embed_dim), dtype=jnp.float32)

    out = add_learned_positional_embedding(x, table, scale=True)
    out = jax.block_until_ready(out)

    ref = _reference(x, table, scale=True)
    assert out.shape == (seq_len, batch, embed_dim)
    assert out.dtype == x.dtype
    assert jnp.allclose(out, ref, atol=1e-5, rtol=1e-5)

    print("KERNEL_OK")
</pallas_src>

<mosaic_0001>
module attributes {stable_mosaic.version = 11 : i64} {
  func.func @_add_pe_kernel(%arg0: i32, %arg1: memref<8x128xf32, #tpu.memory_space<vmem>>, %arg2: memref<1x128xf32, #tpu.memory_space<vmem>>, %arg3: memref<8x128xf32, #tpu.memory_space<vmem>>) attributes {dimension_semantics = [#tpu.dimension_semantics<parallel>], iteration_bounds = array<i64: 1>, scalar_prefetch = 0 : i64, scratch_operands = 0 : i64, tpu.core_type = #tpu.core_type<tc>, window_params = [{transform_indices = @transform_0, window_bounds = array<i64: 8, 128>}, {pipeline_mode = #tpu.pipeline_mode<synchronous>, transform_indices = @transform_1, window_bounds = array<i64: 1, 128>}, {transform_indices = @transform_2, window_bounds = array<i64: 8, 128>}]} {
    %c0 = arith.constant 0 : index
    %c0_0 = arith.constant 0 : index
    %0 = vector.load %arg1[%c0, %c0_0] : memref<8x128xf32, #tpu.memory_space<vmem>>, vector<8x128xf32>
    %cst = arith.constant 8.000000e+00 : f32
    %1 = vector.broadcast %cst : f32 to vector<8x128xf32>
    %2 = arith.mulf %0, %1 : vector<8x128xf32>
    %c0_1 = arith.constant 0 : index
    %c0_2 = arith.constant 0 : index
    %3 = vector.load %arg2[%c0_1, %c0_2] : memref<1x128xf32, #tpu.memory_space<vmem>>, vector<1x128xf32>
    %4 = vector.broadcast %3 : vector<1x128xf32> to vector<8x128xf32>
    %5 = arith.addf %2, %4 : vector<8x128xf32>
    %c0_3 = arith.constant 0 : index
    %c0_4 = arith.constant 0 : index
    %6 = vector.load %arg3[%c0_3, %c0_4] : memref<8x128xf32, #tpu.memory_space<vmem>>, vector<8x128xf32>
    tpu.vector_store %arg3[%c0_3, %c0_4], %5 {strides = array<i32>} : memref<8x128xf32, #tpu.memory_space<vmem>>, vector<8x128xf32>,
    return
  }
  func.func @transform_0(%arg0: i32) -> (i32, i32) {
    %c0_i32 = arith.constant 0 : i32
    %c0_i32_0 = arith.constant 0 : i32
    return %arg0, %c0_i32 : i32, i32
  }
  func.func @transform_1(%arg0: i32) -> (i32, i32) {
    %c0_i32 = arith.constant 0 : i32
    %c0_i32_0 = arith.constant 0 : i32
    %c0_i32_1 = arith.constant 0 : i32
    return %c0_i32, %c0_i32_0 : i32, i32
  }
  func.func @transform_2(%arg0: i32) -> (i32, i32) {
    %c0_i32 = arith.constant 0 : i32
    %c0_i32_0 = arith.constant 0 : i32
    return %arg0, %c0_i32 : i32, i32
  }
}

</mosaic_0001>

<bundles_post_ra>
// kernel: tpu_custom_call.1
= control target key start
LH: loop header
LB: loop body
LE: loop exit
PB: predicated region body
PF: predicated region fallthrough
CT: control target
= control target key end

     0   :  { %7 = vsyncpa [#allocation3], 0  ;;  %s175_s0 = inlined_call_operand.hbm [shape: f32[8,128], index: 0, kind: input, shape index: {}]   ;;  %s176_s1 = inlined_call_operand.hbm [shape: f32[1,128], index: 1, kind: input, shape index: {}]   ;;  %s177_s2 = inlined_call_operand.hbm [shape: f32[8,128], index: 2, kind: output, shape index: {}]  }
   0x1   :  { %8 = vsyncpa [#allocation6], 0 }
   0x2   :  { %9 = vsyncpa [#allocation4], 0  ;;  %s15_s11 = sshll.u32 %s175_s0, 4  ;;  %s148_s12 = smov [#allocation2]   ;;  %s16_s11 = int_to_ptr.hbm [resolvable:$true] %s15_s11 }
   0x3   :  { %s17_s13 = sshll.u32 %s148_s12, 4  ;;  %s26_s16 = sshll.u32 %s176_s1, 4  ;;  %s18_s13 = int_to_ptr.vmem [resolvable:$true] %s17_s13  ;;  %s27_s16 = int_to_ptr.hbm [resolvable:$true] %s26_s16 }
   0x4   :  { %20 = dma.hbm_to_vmem [thread:$0]  %s16_s11, 128, %s18_s13, [#allocation3]  }
   0x5   :  { %s149_s17 = smov [#allocation5]  }
   0x6   :  { %s28_s18 = sshll.u32 %s149_s17, 4  ;;  %s29_s18 = int_to_ptr.vmem [resolvable:$true] %s28_s18 }
   0x7   :  { %31 = dma.hbm_to_vmem [thread:$0]  %s27_s16, 16, %s29_s18, [#allocation6]  }
   0x8   :  { %142 = dma.done.wait [#allocation3], 128  }
   0x9   :  { %143 = vsyncadd [#allocation3], 4294967168 }
   0xa   :  { %144 = dma.done.wait [#allocation6], 16  }
   0xb   :  { %145 = vsyncadd [#allocation6], 4294967280  ;;  %s55_s20 = sshll.u32 %s177_s2, 4  ;;  %v40_v0 = vld [vmem:[#allocation2] sm:$0xff]  ;;  %v69_v1 = vld [vmem:[#allocation5] ss:$0 sm:$0xff]  ;;  %s56_s20 = int_to_ptr.hbm [resolvable:$true] %s55_s20 }
   0xc   :  { %s150_s21 = smov [#allocation7]   ;;  %v41_v2 = vmul.f32 8.0, %v40_v0 }
   0xd   :  { %s53_s22 = sshll.u32 %s150_s21, 4  ;;  %s54_s22 = int_to_ptr.vmem [resolvable:$true] %s53_s22 }
   0xe   :  { %v46_v3 = vadd.f32 %v69_v1, %v41_v2 }
  0x10   :  { %47 = vst [vmem:[#allocation7] sm:$0xff] %v46_v3 }
  0x11   :  { %58 = dma.vmem_to_hbm [thread:$0]  %s54_s22, 128, %s56_s20, [#allocation4]  }
  0x12   :  { %146 = dma.done.wait [#allocation4], 128  }
  0x13   :  { %147 = vsyncadd [#allocation4], 4294967168 }
  0x14   :  { %63 = vsyncpa [#allocation3], 1 }
  0x15   :  { %64 = vsyncpa [#allocation6], 1 }
  0x16   :  { %65 = vsyncpa [#allocation4], 1 }

</bundles_post_ra>
